<compile_context>
chip_gen: v5e
topology: v5e:2x2
jax: 0.10.0
libtpu: 0.0.40
codegen_flags: <defaults>
</compile_context>

<pallas_src>
import functools

import jax
import jax.numpy as jnp
from jax.experimental import pallas as pl
from jax.experimental.pallas import tpu as pltpu


def _drop_path_kernel(mask_ref, x_ref, o_ref, *, inv_keep: float):
    # mask_ref: (B,) int32 in SMEM (scalar prefetch); x_ref/o_ref: (1, TR, LANE)
    # VMEM tiles.  Scale stays in f32; only the final product is cast.
    keep = mask_ref[pl.program_id(0)]                     # 0 / 1 scalar (SMEM)

    @pl.when(keep == 0)
    def _():
        # Dropped sample: the input block was redirected (its DMA is skipped
        # after the first revisit), so write zeros explicitly.
        o_ref[...] = jnp.zeros_like(o_ref)

    @pl.when(keep != 0)
    def _():
        o_ref[...] = (x_ref[...].astype(jnp.float32) * inv_keep).astype(o_ref.dtype)


def _pick_layout(feat: int):
    """Pick (lane, feat_pad, rows): lane % 128 == 0, prefer rows >= 8."""
    for cand in (1024, 512, 256, 128):
        if feat % cand == 0 and feat // cand >= 8:
            return cand, feat, feat // cand
    for cand in (1024, 512, 256, 128):
        if feat % cand == 0:
            return cand, feat, feat // cand
    lane = 128
    feat_pad = -(-feat // lane) * lane
    return lane, feat_pad, feat_pad // lane


def drop_path(x, key, drop_prob: float = 0.0, training: bool = False,
              scale_by_keep: bool = True):
    """JAX/Pallas equivalent of PrithviWxC drop_path()."""
    if drop_prob == 0.0 or not training:
        return x

    keep_prob = 1.0 - drop_prob
    b = int(x.shape[0])
    feat = 1
    for d in x.shape[1:]:
        feat *= int(d)

    # Per-sample Bernoulli(keep_prob) mask — same semantics as
    # x.new_empty((B,1,...,1)).bernoulli_(keep_prob).
    # NOTE: drop_prob == 1.0 => keep_prob == 0 => all-zero output (matches timm).
    mask = jax.random.bernoulli(key, p=keep_prob, shape=(b,)).astype(jnp.int32)
    inv_keep = (1.0 / keep_prob) if (keep_prob > 0.0 and scale_by_keep) else 1.0

    # Lane/sublane-dense per-sample view: (B, rows, LANE).
    lane, feat_pad, rows = _pick_layout(feat)
    x2 = x.reshape(b, feat)
    if feat_pad != feat:
        # TODO(synk): for very large unaligned feature counts this pad+slice
        # costs an extra HBM round trip; a full-extent 2-D block path could
        # avoid it.
        x2 = jnp.pad(x2, ((0, 0), (0, feat_pad - feat)))
    x3 = x2.reshape(b, rows, lane)

    # Row-tile size: ~2 MiB input tile -> (in + out) * double-buffer ~= 8 MiB
    # VMEM.  TR is a multiple of 8 (sublane) or the full row extent.
    itemsize = x.dtype.itemsize
    tr = max(8, ((2 << 20) // (lane * itemsize)) // 8 * 8)
    if tr >= rows:
        tr = rows                                     # full extent (always legal)
    grid = (b, pl.cdiv(rows, tr))

    def x_index_map(bi, ri, mask_ref):
        keep = mask_ref[bi]
        # Dropped samples pin the input block to (0, 0, 0): consecutive grid
        # steps then see an unchanged input block index and the pipeline skips
        # the DMA (kernel writes zeros for those samples regardless).
        return (keep * bi, keep * ri, 0)

    out = pl.pallas_call(
        functools.partial(_drop_path_kernel, inv_keep=inv_keep),
        out_shape=jax.ShapeDtypeStruct((b, rows, lane), x.dtype),
        grid_spec=pltpu.PrefetchScalarGridSpec(
            num_scalar_prefetch=1,                    # mask -> SMEM
            grid=grid,
            in_specs=[pl.BlockSpec((1, tr, lane), x_index_map)],
            out_specs=pl.BlockSpec((1, tr, lane),
                                   lambda bi, ri, mask_ref: (bi, ri, 0)),
        ),
        compiler_params=pltpu.CompilerParams(
            dimension_semantics=("parallel", "parallel"),  # v7x: shard over 2 TCs
            vmem_limit_bytes=32 * 1024 * 1024,             # safe on v5e..v7x
        ),
        cost_estimate=pl.CostEstimate(
            flops=b * rows * lane,
            transcendentals=0,
            bytes_accessed=2 * b * rows * lane * itemsize,
        ),
    )(mask, x3)

    out = out.reshape(b, feat_pad)
    if feat_pad != feat:
        out = out[:, :feat]
    return out.reshape(x.shape)


class DropPath:
    """Drop paths (Stochastic Depth) per sample (main path of residual blocks)."""

    def __init__(self, drop_prob=None, scale_by_keep=True):
        self.drop_prob = drop_prob
        self.scale_by_keep = scale_by_keep
        self.training = True  # mirror nn.Module.train() default for the demo

    def __call__(self, x, key):
        return drop_path(x, key,
                         drop_prob=self.drop_prob if self.drop_prob else 0.0,
                         training=self.training,
                         scale_by_keep=self.scale_by_keep)


if __name__ == "__main__":
    key = jax.random.PRNGKey(0)
    k_x, k_mask = jax.random.split(key)

    # NCHW input matching the module: batch=2, channels=4, spatial=16x16.
    x = jax.random.normal(k_x, (2, 4, 16, 16), dtype=jnp.float32)

    module = DropPath(drop_prob=0.3, scale_by_keep=True)
    y = jax.block_until_ready(module(x, k_mask))

    # Reference check (pure JAX) with the identical mask draw.
    keep_prob = 1.0 - 0.3
    mask_ref = jax.random.bernoulli(k_mask, p=keep_prob, shape=(2,)).astype(jnp.float32)
    ref = x * (mask_ref / keep_prob).reshape(2, 1, 1, 1)
    assert y.shape == x.shape and y.dtype == x.dtype
    assert jnp.allclose(y, ref, atol=1e-6, rtol=1e-6)

    # Feature count that is not a multiple of 128 exercises the padding path.
    x_odd = jax.random.normal(k_x, (2, 3, 10, 10), dtype=jnp.float32)
    y_odd = jax.block_until_ready(module(x_odd, k_mask))
    ref_odd = x_odd * (mask_ref / keep_prob).reshape(2, 1, 1, 1)
    assert y_odd.shape == x_odd.shape
    assert jnp.allclose(y_odd, ref_odd, atol=1e-6, rtol=1e-6)

    # drop_prob = 1.0: every sample dropped -> all-zero output; deterministically
    # exercises the zero-write branch and the input-block redirect.
    module_all = DropPath(drop_prob=1.0, scale_by_keep=True)
    y_zero = jax.block_until_ready(module_all(x, k_mask))
    assert jnp.array_equal(y_zero, jnp.zeros_like(x))

    # Eval / drop_prob=0 path is identity.
    module.training = False
    y_eval = jax.block_until_ready(module(x, k_mask))
    assert jnp.array_equal(y_eval, x)

    print("KERNEL_OK")
</pallas_src>

<mosaic_0001>
module attributes {stable_mosaic.version = 11 : i64} {
  func.func @_drop_path_kernel(%arg0: i32, %arg1: i32, %arg2: memref<2xi32, #tpu.memory_space<smem>>, %arg3: memref<1x8x128xf32, #tpu.memory_space<vmem>>, %arg4: memref<1x8x128xf32, #tpu.memory_space<vmem>>) attributes {dimension_semantics = [#tpu.dimension_semantics<parallel>, #tpu.dimension_semantics<parallel>], iteration_bounds = array<i64: 2, 1>, scalar_prefetch = 1 : i64, scratch_operands = 0 : i64, tpu.core_type = #tpu.core_type<tc>, window_params = [{transform_indices = @transform_0, window_bounds = array<i64: 1, 8, 128>}, {transform_indices = @transform_1, window_bounds = array<i64: 1, 8, 128>}]} {
    %0 = arith.index_cast %arg0 : i32 to index
    %1 = memref.load %arg2[%0] : memref<2xi32, #tpu.memory_space<smem>>
    %c0_i32 = arith.constant 0 : i32
    %2 = arith.cmpi eq, %1, %c0_i32 : i32
    %3 = arith.extui %2 : i1 to i32
    %c0_i32_0 = arith.constant 0 : i32
    %4 = arith.cmpi ne, %3, %c0_i32_0 : i32
    scf.if %4 {
      %cst = arith.constant 0.000000e+00 : f32
      %8 = vector.broadcast %cst : f32 to vector<1x8x128xf32>
      %c0 = arith.constant 0 : index
      %c0_3 = arith.constant 0 : index
      %c0_4 = arith.constant 0 : index
      %9 = vector.load %arg4[%c0, %c0_3, %c0_4] : memref<1x8x128xf32, #tpu.memory_space<vmem>>, vector<1x8x128xf32>
      tpu.vector_store %arg4[%c0, %c0_3, %c0_4], %8 {strides = array<i32>} : memref<1x8x128xf32, #tpu.memory_space<vmem>>, vector<1x8x128xf32>,
    } else {
    }
    %c0_i32_1 = arith.constant 0 : i32
    %5 = arith.cmpi ne, %1, %c0_i32_1 : i32
    %6 = arith.extui %5 : i1 to i32
    %c0_i32_2 = arith.constant 0 : i32
    %7 = arith.cmpi ne, %6, %c0_i32_2 : i32
    scf.if %7 {
      %c0 = arith.constant 0 : index
      %c0_3 = arith.constant 0 : index
      %c0_4 = arith.constant 0 : index
      %8 = vector.load %arg3[%c0, %c0_3, %c0_4] : memref<1x8x128xf32, #tpu.memory_space<vmem>>, vector<1x8x128xf32>
      %cst = arith.constant 1.42857146 : f32
      %9 = vector.broadcast %cst : f32 to vector<1x8x128xf32>
      %10 = arith.mulf %8, %9 : vector<1x8x128xf32>
      %c0_5 = arith.constant 0 : index
      %c0_6 = arith.constant 0 : index
      %c0_7 = arith.constant 0 : index
      %11 = vector.load %arg4[%c0_5, %c0_6, %c0_7] : memref<1x8x128xf32, #tpu.memory_space<vmem>>, vector<1x8x128xf32>
      tpu.vector_store %arg4[%c0_5, %c0_6, %c0_7], %10 {strides = array<i32>} : memref<1x8x128xf32, #tpu.memory_space<vmem>>, vector<1x8x128xf32>,
    } else {
    }
    return
  }
  func.func @transform_0(%arg0: i32, %arg1: i32, %arg2: memref<2xi32, #tpu.memory_space<smem>>) -> (i32, i32, i32) {
    %0 = arith.index_cast %arg0 : i32 to index
    %1 = memref.load %arg2[%0] : memref<2xi32, #tpu.memory_space<smem>>
    %2 = arith.muli %1, %arg0 : i32
    %3 = arith.muli %1, %arg1 : i32
    %c0_i32 = arith.constant 0 : i32
    %c0_i32_0 = arith.constant 0 : i32
    return %2, %3, %c0_i32 : i32, i32, i32
  }
  func.func @transform_1(%arg0: i32, %arg1: i32, %arg2: memref<2xi32, #tpu.memory_space<smem>>) -> (i32, i32, i32) {
    %c0_i32 = arith.constant 0 : i32
    %c0_i32_0 = arith.constant 0 : i32
    return %arg0, %arg1, %c0_i32 : i32, i32, i32
  }
}

</mosaic_0001>

<bundles_post_ra>
// kernel: tpu_custom_call.1
= control target key start
LH: loop header
LB: loop body
LE: loop exit
PB: predicated region body
PF: predicated region fallthrough
CT: control target
= control target key end

     0   :  { %s541_s12 = smov [#allocation3]   ;;  %s731_s0 = inlined_call_operand.hbm [shape: s32[2], index: 0, kind: input, shape index: {}]   ;;  %s732_s1 = inlined_call_operand.hbm [shape: f32[2,8,128], index: 1, kind: input, shape index: {}]   ;;  %s733_s2 = inlined_call_operand.hbm [shape: f32[2,8,128], index: 2, kind: output, shape index: {}]  }
   0x1   :  { %s8_s11 = sshll.u32 %s731_s0, 4  ;;  %s9_s11 = int_to_ptr.hbm [resolvable:$true] %s8_s11 }
   0x2   :  { %11 = dma.hbm_to_smem %s9_s11, 16, %s541_s12, [#allocation2] }
   0x3   :  { %495 = dma.done.wait [#allocation2], 16 }
   0x4   :  { %496 = vsyncadd [#allocation2], 4294967280 }
   0x5   :  { %14 = sfence }
   0x6   :  { %15 = vsyncpa [#allocation5], 0 }
   0x7   :  { %17 = vsyncpa [#allocation5 + $0x1], 0 }
   0x8   :  { %18 = vsyncpa [#allocation6], 0 }
   0x9   :  { %20 = vsyncpa [#allocation6 + $0x1], 0  ;;  %s561_s13 = smov 0   ;;  %s563_s14 = smov 0  }
   0xa   :  { %s565_s15 = smov 0   ;;  %s567_s16 = smov 0  }
   0xb   :  { %s569_s17 = smov 0   ;;  %s571_s0 = smov 0  }
   0xc   :  { %s573_s18 = smov 0   ;;  %s575_s19 = smov 0  }
   0xd   :  { %s577_s20 = smov 0  }
   0xe LB: > { %s282_s21 = sadd.s32 4294967295, %s539_s20   ;;  %s38_s22 = sadd.s32 1, %s535_s19  ;;  %s539_s20 = sphi %s577_s20, %s26_s20   ;;  %s535_s19 = sphi %s575_s19, %s751_s19   ;;  %s531_s18 = sphi %s573_s18, %s750_s18   ;;  %s527_s0 = sphi %s571_s0, %s749_s0   ;;  %s523_s17 = sphi %s569_s17, %s748_s17   ;;  %s519_s16 = sphi %s567_s16, %s747_s16   ;;  %s515_s15 = sphi %s565_s15, %s746_s15   ;;  %s511_s14 = sphi %s563_s14, %s745_s14   ;;  %s507_s13 = sphi %s561_s13, %s744_s13  }
   0xf   : > { %s42_s23 = sld [smem:[#allocation3 + %s535_s19]]  ;;  %s283_s24 = sadd.s32 4294967294, %s539_s20  }
  0x10   : > { %p40_p0 = scmp.ge.s32.totalorder %s38_s22, 2  ;;  %s53_s25 = sadd.s32 1, %s527_s0 }
  0x11   : > { %p60_p1 = scmp.ne.s32.totalorder %s527_s0, %s523_s17  ;;  %p61_p2 = scmp.eq.s32.totalorder %s539_s20, 0 }
  0x12   : > { %s753_s22 = smov (%p40_p0, %s38_s22), 0  ;;  %p66_p3 = scmp.ne.s32.totalorder %s523_s17, %s519_s16 }
  0x13   : > { %735 = sst [smem:[#allocation13_spill]] %s753_s22  ;;  %p67_p4 = scmp.eq.s32.totalorder %s282_s21, 0 }
  0x14   : > { %s45_s26 = sld [smem:[#allocation3 + %s753_s22]]  ;;  %s76_s28 = ssub.s32 %s535_s19, %s753_s22 }
  0x15   : > { %s43_s27 = smul.u32 %s535_s19, %s42_s23  ;;  %p619_p5 = por %p67_p4, %p66_p3 }
  0x16   : > { %p79_p6 = scmp.eq.s32.totalorder %s76_s28, 0  ;;  %s81_s30 = sadd.s32 1, %s515_s15 }
  0x17   : > { %p91_p7 = scmp.ne.s32.totalorder %s515_s15, %s511_s14  ;;  %p92_p8 = scmp.eq.s32.totalorder %s282_s21, 1 }
  0x18   : > { %s627_s3 = scalar_select %p79_p6, %s515_s15, %s81_s30  }
  0x19   : > { %p97_p9 = scmp.ne.s32.totalorder %s511_s14, %s507_s13  ;;  %p98_p10 = scmp.eq.s32.totalorder %s283_s24, 1 }
  0x1a   : > { %s46_s4 = smul.u32 %s45_s26, %s753_s22  ;;  %p632_p11 = por %p92_p8, %p91_p7 }
  0x1b   : > { %p285_p12 = scmp.ge.s32.totalorder %s539_s20, 2  ;;  %p637_p13 = por %p98_p10, %p97_p9 }
  0x1c   : > { %s48_s6 = ssub.s32 %s43_s27, %s46_s4  ;;  %p62_p3 = por %p61_p2, %p60_p1 }
  0x1d   : > { %p51_p0 = scmp.eq.s32.totalorder %s48_s6, 0  ;;  %p313_p4 = scmp.lt.s32.totalorder %s539_s20, 2 }
  0x1e   : > { %s118_s9 = sand.u32 1, %s527_s0   ;;  %p288_p7 = scmp.ge.s32.totalorder %s539_s20, 1 }
  0x1f   : > { %s648_s8 = scalar_select %p51_p0, %s527_s0, %s53_s25  }
  0x20   : > { %p651_p6 = pnand %p313_p4, %p62_p3  ;;  %s286_s16 = sshll.u32 %s118_s9, 3 }
  0x21   : > { %739 = sst [smem:[#allocation14_spill]] %s648_s8  ;;  %p139_p8 = scmp.lt.s32.totalorder %s539_s20, 3 }
  0x22   : > { %s297_s11 = scalar_select %p62_p3, [#allocation3], [#allocation8] }
  0x23   : > { %s298_s12 = scalar_select %p62_p3, %s535_s19, 0 }
  0x24   : > { %s755_s11 = smov (!%p313_p4, %s297_s11), [#allocation9]  ;;  %p658_p9 = pnand %p288_p7, %p139_p8 }
  0x25   : > { %s757_s12 = smov (!%p313_p4, %s298_s12), 0  ;;  %s122_s25 = scalar_lea.vmem [#allocation4], %s286_s16 }
  0x26   : > { %s123_s21 = sld [smem:[%s755_s11 + %s757_s12]]  ;;  %s134_s26 = sshll.u32 %s122_s25, 4  ;;  %s135_s26 = int_to_ptr.vmem [resolvable:$true] %s134_s26 }
  0x27   : > { %s119_s22 = scalar_lea.sflag [#allocation5], %s118_s9  ;;  %p405_p2 = pneg %p651_p6 }
  0x2c   : > { %s124_s24 = smul.u32 %s535_s19, %s123_s21  ;;  %s408_s21 = scalar_lea.hbm %s732_s1, 16 }
  0x2e   : > { %s287_s27 = sshll.u32 %s124_s24, 3 }
  0x2f   : > { %s130_s4 = scalar_lea.hbm %s732_s1, %s287_s27 }
  0x30   : > { %s132_s6 = sshll.u32 %s130_s4, 4  ;;  %s133_s6 = int_to_ptr.hbm [resolvable:$true] %s132_s6 }
  0x31   : > { %s401_s8 = sshra.s32 %s133_s6, 4  ;;  %s402_s8 = int_to_ptr.hbm [resolvable:$true] %s401_s8 }
  0x32   : > { %s403_s11 = scalar_lea.hbm %s402_s8, 8  ;;  %p409_p3 = scmp.lt.s32.totalorder %s402_s8, %s732_s1 }
  0x33   : > { %p404_p1 = scmp.ne.s32.totalorder %s402_s8, %s403_s11  ;;  %p410_p4 = scmp.lt.s32.totalorder %s408_s21, %s403_s11 }
  0x35   : > { %p406_p10 = pnand %p405_p2, %p404_p1  ;;  %p411_p7 = por %p410_p4, %p409_p3 }
  0x37   : > { %p407_p0 = pneg %p406_p10 }
  0x39   : > { %p412_p8 = pnand %p411_p7, %p407_p0 }
  0x3b   : > { %415 = shalt.err (!%p412_p8)
}
  0x3c   : > { %308 = dma.hbm_to_vmem [thread:$0]  (!%p651_p6), %s133_s6, 128, %s135_s26, %s119_s22  }
  0x3d   : > { %143 = sbr.rel (%p658_p9) target bundleno = 108 (0x6c), region = 24  ;;  %s145_s9 = sand.u32 (!%p658_p9), 1, %s523_s17  }
  0x3e   : > { %s289_s27 = sshll.u32 (!%p658_p9), %s145_s9, 3  ;;  %s146_s28 = scalar_lea.sflag (!%p658_p9), [#allocation5], %s145_s9 }
  0x3f   : > { %s149_s30 = scalar_lea.vmem (!%p658_p9), [#allocation4], %s289_s27 }
  0x42   : > { %498 = dma.done.wait (%p619_p5), %s146_s28, 128  }
  0x43   : > { %500 = vsyncadd (%p619_p5), %s146_s28, 4294967168  ;;  %s166_s8 = sand.u32 1, %s511_s14   ;;  %s172_s4 = sld [smem:[#allocation3 + %s531_s18]] }
  0x44   : > { %s290_s10 = sshll.u32 %s166_s8, 3 }
  0x45   : > { %s168_s22 = scalar_lea.vmem [#allocation7], %s290_s10 }
  0x49   : > { %p291_p6 = scmp.ne.s32.totalorder %s172_s4, 0 }
  0x4b   : > { %176 = sbr.rel (%p291_p6) target bundleno = 82 (0x52), region = 32 }
  0x50   : > { %v542_v0 = vmov 0.0  }
  0x51   : > { %177 = vst [vmem:[%s168_s22] sm:$0xff] %v542_v0 }
  0x52 PF: > { %p292_p9 = scmp.eq.s32.totalorder %s172_s4, 0 }
  0x54   : > { %181 = sbr.rel (%p292_p9) target bundleno = 93 (0x5d), region = 36 }
  0x59   : > { %v182_v1 = vld [vmem:[%s149_s30] sm:$0xff] }
  0x5a   : > { %v183_v2 = vmul.f32 1.4285715, %v182_v1 }
  0x5c   : > { %184 = vst [vmem:[%s168_s22] sm:$0xff] %v183_v2 }
  0x5d PF: > { %s294_s29 = sshll.u32 %s531_s18, 3  ;;  %s199_s11 = sshll.u32 %s168_s22, 4  ;;  %s200_s11 = int_to_ptr.vmem [resolvable:$true] %s199_s11 }
  0x5e   : > { %s197_s6 = scalar_lea.hbm %s733_s2, %s294_s29  ;;  %s186_s16 = scalar_lea.sflag [#allocation6], %s166_s8 }
  0x5f   : > { %s201_s12 = sshll.u32 %s197_s6, 4  ;;  %s451_s18 = scalar_lea.hbm %s733_s2, 16  ;;  %s202_s12 = int_to_ptr.hbm [resolvable:$true] %s201_s12 }
  0x60   : > { %s445_s21 = sshra.s32 %s202_s12, 4  ;;  %s446_s21 = int_to_ptr.hbm [resolvable:$true] %s445_s21 }
  0x61   : > { %s447_s24 = scalar_lea.hbm %s446_s21, 8  ;;  %p452_p10 = scmp.lt.s32.totalorder %s446_s21, %s733_s2 }
  0x62   : > { %p448_p5 = scmp.ne.s32.totalorder %s446_s21, %s447_s24  ;;  %p453_p0 = scmp.lt.s32.totalorder %s451_s18, %s447_s24 }
  0x64   : > { %p449_p1 = pnand %p448_p5, %p632_p11  ;;  %p454_p3 = por %p453_p0, %p452_p10 }
  0x66   : > { %p450_p2 = pneg %p449_p1 }
  0x68   : > { %p455_p4 = pnand %p454_p3, %p450_p2 }
  0x6a   : > { %458 = shalt.err (!%p455_p4)
}
  0x6b   : > { %301 = dma.vmem_to_hbm [thread:$0]  (%p632_p11), %s200_s11, 128, %s202_s12, %s186_s16  }
  0x6c PF: > { %s213_s30 = sand.u32 1, %s507_s13   ;;  %p310_p7 = pnand %p285_p12, %p637_p13 }
  0x6d   : > { %s214_s8 = scalar_lea.sflag [#allocation6], %s213_s30 }
  0x6e   : > { %p311_p8 = pneg %p310_p7 }
  0x70   : > { %502 = dma.done.wait (%p311_p8), %s214_s8, 128  }
  0x71   : > { %504 = vsyncadd (%p311_p8), %s214_s8, 4294967168  ;;  %s26_s20 = sadd.s32 1, %s539_s20   ;;  %s742_s5 = sld [smem:[#allocation14_spill]] }
  0x72   : > { %p23_p6 = scmp.ge.s32.totalorder %s26_s20, 4   ;;  %s743_s4 = sld [smem:[#allocation13_spill]] }
  0x73   : > { %s744_s13 = smov %s511_s14  ;;  %s745_s14 = smov %s515_s15 }
  0x74   : > { %s746_s15 = smov %s627_s3  ;;  %s747_s16 = smov %s523_s17 }
  0x75   : > { %s748_s17 = smov %s527_s0  ;;  %s750_s18 = smov %s535_s19 }
  0x76   :  { %25 = sbr.rel (!%p23_p6) target bundleno = 14 (0xe), region = 77 }
  0x77   : > { %s749_s0 = smov %s742_s5 }
  0x78   : > { %s751_s19 = smov %s743_s4 }
  0x7b   :  { %220 = vsyncpa [#allocation5], 1 }
  0x7c   :  { %222 = vsyncpa [#allocation5 + $0x1], 1 }
  0x7d   :  { %223 = vsyncpa [#allocation6], 1 }
  0x7e   :  { %225 = vsyncpa [#allocation6 + $0x1], 1 }

</bundles_post_ra>
